<compile_context>
chip_gen: v7x
topology: tpu7x:2x2x1
jax: 0.10.0
libtpu: 0.0.40
codegen_flags: <defaults>
</compile_context>

<pallas_src>
from functools import partial

import jax
import jax.numpy as jnp
from jax.experimental import pallas as pl
from jax.experimental.pallas import tpu as pltpu

HIDDEN = 256


def qnet_kernel(x_ref, w1t_ref, b1_ref, w2t_ref, b2_ref, w3r_ref, b3_ref, o_ref):
    # ---- Layer 1: (256, in_dim) @ (in_dim, tb), bf16 in / f32 accumulate
    h1 = jnp.dot(w1t_ref[...], x_ref[...], preferred_element_type=jnp.float32)
    h1 = jnp.maximum(h1 + b1_ref[...], 0.0)          # f32 bias + ReLU (VPU)

    # ---- Layer 2: (256, 256) @ (256, tb), bf16 in / f32 accumulate
    h2 = jnp.dot(w2t_ref[...], h1.astype(jnp.bfloat16),
                 preferred_element_type=jnp.float32)
    h2 = jnp.maximum(h2 + b2_ref[...], 0.0)

    # ---- Layer 3: (1, 256) @ (256, tb) kept fully in f32 (tiny; M=1)
    q = jnp.dot(w3r_ref[...], h2, preferred_element_type=jnp.float32)
    o_ref[...] = (q + b3_ref[0]).astype(o_ref.dtype)  # unmasked lane-dense store


def pack_params(params):
    """Convert f32 [in,out]-layout params into kernel-ready feature-major tensors."""
    w1, b1, w2, b2, w3, b3 = params
    return (
        w1.T.astype(jnp.bfloat16),               # (256, in_dim)
        b1.reshape(-1, 1).astype(jnp.float32),   # (256, 1)   column bias
        w2.T.astype(jnp.bfloat16),               # (256, 256)
        b2.reshape(-1, 1).astype(jnp.float32),   # (256, 1)
        w3.T.astype(jnp.float32),                # (1, 256)   f32 (accuracy, tiny)
        b3.reshape(1).astype(jnp.float32),       # (1,)       SMEM scalar
    )


@partial(jax.jit, static_argnames=("block_b", "min_tiles"))
def qnet_forward(ob, act, kparams, *, block_b=1024, min_tiles=1):
    """Pallas forward. ob: (B, ob_dim), act: (B, act_dim) -> q: (B,).

    block_b:  batch tile (multiple of 128).  1024-2048 amortizes the per-grid-
              step overhead for large batches; small batches auto-shrink.
    min_tiles: set to 2 on v7x so the batch splits across both TensorCores.
    """
    w1t, b1, w2t, b2, w3r, b3 = kparams
    assert block_b % 128 == 0, "block_b must be a multiple of 128"
    B = ob.shape[0]
    in_dim = ob.shape[1] + act.shape[1]

    # Feature-major input: cast to bf16 first, then concat + transpose (cheap:
    # B * in_dim * 2 bytes of XLA work outside the kernel).
    x = jnp.concatenate(
        [ob.astype(jnp.bfloat16), act.astype(jnp.bfloat16)], axis=1).T  # (in_dim, B)

    # Tile size: no larger than needed, always a multiple of 128, and split
    # into at least `min_tiles` grid steps (v7x dual-TC).
    per_tile = -(-B // min_tiles)                      # ceil(B / min_tiles)
    tb = max(128, min(block_b, ((per_tile + 127) // 128) * 128))
    g = -(-B // tb)
    b_pad = g * tb
    if b_pad != B:                                     # pad ragged tail (bf16 pad)
        x = jnp.pad(x, ((0, 0), (0, b_pad - B)))

    out = pl.pallas_call(
        qnet_kernel,
        out_shape=jax.ShapeDtypeStruct((1, b_pad), jnp.float32),
        grid=(g,),
        in_specs=[
            # activations: one dense (in_dim, tb) bf16 tile per grid step
            pl.BlockSpec((in_dim, tb), lambda i: (0, i)),
            # weights / biases: constant index_map -> fetched once, VMEM resident
            pl.BlockSpec(w1t.shape, lambda i: (0, 0)),
            pl.BlockSpec(b1.shape, lambda i: (0, 0)),
            pl.BlockSpec(w2t.shape, lambda i: (0, 0)),
            pl.BlockSpec(b2.shape, lambda i: (0, 0)),
            pl.BlockSpec(w3r.shape, lambda i: (0, 0)),
            # scalar output bias lives in SMEM
            pl.BlockSpec(memory_space=pltpu.MemorySpace.SMEM),
        ],
        # lane-dense output: (1, tb) row per batch tile, unmasked stores
        out_specs=pl.BlockSpec((1, tb), lambda i: (0, i)),
        compiler_params=pltpu.CompilerParams(
            dimension_semantics=("parallel",)),        # megacore: tiles across TCs
    )(x, w1t, b1, w2t, b2, w3r, b3)

    # (1, b_pad) -> (B,)  (torch's .squeeze()); padded tail rows are discarded here.
    return out.reshape(b_pad)[:B]


def init_qnet_params(key, ob_dim, act_dim):
    """Deterministic init mimicking nn.Linear default U(-1/sqrt(fan_in), ..)."""
    dims = [(ob_dim + act_dim, HIDDEN), (HIDDEN, HIDDEN), (HIDDEN, 1)]
    params = []
    for fan_in, fan_out in dims:
        key, kw, kb = jax.random.split(key, 3)
        bound = 1.0 / jnp.sqrt(jnp.float32(fan_in))
        w = jax.random.uniform(kw, (fan_in, fan_out), jnp.float32, -bound, bound)
        b = jax.random.uniform(kb, (1, fan_out), jnp.float32, -bound, bound)
        params += [w, b]
    return tuple(params)


def qnet_reference(ob, act, params):
    """Pure-JAX f32 reference (torch semantics) for correctness checking."""
    w1, b1, w2, b2, w3, b3 = params
    x = jnp.concatenate([ob, act], axis=1)
    h1 = jnp.maximum(x @ w1 + b1, 0.0)
    h2 = jnp.maximum(h1 @ w2 + b2, 0.0)
    return jnp.squeeze(h2 @ w3 + b3, axis=-1)


# TODO(synk): soft_update / copy are target-network EMA parameter bookkeeping
# (plain jnp tree ops on the host side), not kernel work, so they are not ported.

if __name__ == "__main__":
    # Small deterministic demo. batch=300 with block_b=128 gives 3 grid tiles
    # and a ragged padded tail, exercising the grid, padding and slicing paths.
    ob_dim, act_dim, batch = 12, 4, 300

    key = jax.random.PRNGKey(0)
    k_ob, k_act, k_params = jax.random.split(key, 3)
    ob = jax.random.normal(k_ob, (batch, ob_dim), jnp.float32)
    act = jax.random.normal(k_act, (batch, act_dim), jnp.float32)

    params = init_qnet_params(k_params, ob_dim, act_dim)
    kparams = pack_params(params)

    # Production: use the defaults (block_b=1024; min_tiles=2 on v7x).
    q = qnet_forward(ob, act, kparams, block_b=128)
    q = jax.block_until_ready(q)

    q_ref = qnet_reference(ob, act, params)
    assert q.shape == (batch,), q.shape
    # bf16 matmul inputs (f32 accumulate, f32 final layer) vs. pure-f32 reference.
    assert jnp.allclose(q, q_ref, atol=5e-2, rtol=5e-2), \
        float(jnp.max(jnp.abs(q - q_ref)))

    print("KERNEL_OK")
</pallas_src>

<mosaic_0001>
module attributes {stable_mosaic.version = 11 : i64} {
  func.func @qnet_kernel(%arg0: i32, %arg1: memref<16x128xbf16, #tpu.memory_space<vmem>>, %arg2: memref<256x16xbf16, #tpu.memory_space<vmem>>, %arg3: memref<256x1xf32, #tpu.memory_space<vmem>>, %arg4: memref<256x256xbf16, #tpu.memory_space<vmem>>, %arg5: memref<256x1xf32, #tpu.memory_space<vmem>>, %arg6: memref<1x256xf32, #tpu.memory_space<vmem>>, %arg7: memref<1xf32, #tpu.memory_space<smem>>, %arg8: memref<1x128xf32, #tpu.memory_space<vmem>>) attributes {dimension_semantics = [#tpu.dimension_semantics<parallel>], iteration_bounds = array<i64: 3>, scalar_prefetch = 0 : i64, scratch_operands = 0 : i64, tpu.core_type = #tpu.core_type<tc>, window_params = [{transform_indices = @transform_0, window_bounds = array<i64: 16, 128>}, {pipeline_mode = #tpu.pipeline_mode<synchronous>, transform_indices = @transform_1, window_bounds = array<i64: 256, 16>}, {pipeline_mode = #tpu.pipeline_mode<synchronous>, transform_indices = @transform_2, window_bounds = array<i64: 256, 1>}, {pipeline_mode = #tpu.pipeline_mode<synchronous>, transform_indices = @transform_3, window_bounds = array<i64: 256, 256>}, {pipeline_mode = #tpu.pipeline_mode<synchronous>, transform_indices = @transform_4, window_bounds = array<i64: 256, 1>}, {pipeline_mode = #tpu.pipeline_mode<synchronous>, transform_indices = @transform_5, window_bounds = array<i64: 1, 256>}, {transform_indices = @transform_6, window_bounds = array<i64: 1>}, {transform_indices = @transform_7, window_bounds = array<i64: 1, 128>}]} {
    %c0 = arith.constant 0 : index
    %c0_0 = arith.constant 0 : index
    %0 = vector.load %arg2[%c0, %c0_0] : memref<256x16xbf16, #tpu.memory_space<vmem>>, vector<256x16xbf16>
    %c0_1 = arith.constant 0 : index
    %c0_2 = arith.constant 0 : index
    %1 = vector.load %arg1[%c0_1, %c0_2] : memref<16x128xbf16, #tpu.memory_space<vmem>>, vector<16x128xbf16>
    %cst = arith.constant dense<0.000000e+00> : vector<256x128xf32>
    %2 = tpu.matmul %0, %1, %cst {dimension_numbers = #tpu.dot_dimension_numbers<[1], [0], [0], [1], [0, 0, 1, 1], [], []>} : vector<256x16xbf16>, vector<16x128xbf16>, vector<256x128xf32> -> vector<256x128xf32>
    %c0_3 = arith.constant 0 : index
    %c0_4 = arith.constant 0 : index
    %3 = vector.load %arg3[%c0_3, %c0_4] : memref<256x1xf32, #tpu.memory_space<vmem>>, vector<256x1xf32>
    %4 = vector.broadcast %3 : vector<256x1xf32> to vector<256x128xf32>
    %5 = arith.addf %2, %4 : vector<256x128xf32>
    %cst_5 = arith.constant 0.000000e+00 : f32
    %6 = vector.broadcast %cst_5 : f32 to vector<256x128xf32>
    %7 = arith.maximumf %5, %6 : vector<256x128xf32>
    %c0_6 = arith.constant 0 : index
    %c0_7 = arith.constant 0 : index
    %8 = vector.load %arg4[%c0_6, %c0_7] : memref<256x256xbf16, #tpu.memory_space<vmem>>, vector<256x256xbf16>
    %9 = arith.truncf %7 : vector<256x128xf32> to vector<256x128xbf16>
    %cst_8 = arith.constant dense<0.000000e+00> : vector<256x128xf32>
    %10 = tpu.matmul %8, %9, %cst_8 {dimension_numbers = #tpu.dot_dimension_numbers<[1], [0], [0], [1], [0, 0, 1, 1], [], []>} : vector<256x256xbf16>, vector<256x128xbf16>, vector<256x128xf32> -> vector<256x128xf32>
    %c0_9 = arith.constant 0 : index
    %c0_10 = arith.constant 0 : index
    %11 = vector.load %arg5[%c0_9, %c0_10] : memref<256x1xf32, #tpu.memory_space<vmem>>, vector<256x1xf32>
    %12 = vector.broadcast %11 : vector<256x1xf32> to vector<256x128xf32>
    %13 = arith.addf %10, %12 : vector<256x128xf32>
    %cst_11 = arith.constant 0.000000e+00 : f32
    %14 = vector.broadcast %cst_11 : f32 to vector<256x128xf32>
    %15 = arith.maximumf %13, %14 : vector<256x128xf32>
    %c0_12 = arith.constant 0 : index
    %c0_13 = arith.constant 0 : index
    %16 = vector.load %arg6[%c0_12, %c0_13] : memref<1x256xf32, #tpu.memory_space<vmem>>, vector<1x256xf32>
    %cst_14 = arith.constant dense<0.000000e+00> : vector<1x128xf32>
    %17 = tpu.matmul %16, %15, %cst_14 {dimension_numbers = #tpu.dot_dimension_numbers<[1], [0], [0], [1], [0, 0, 1, 1], [], []>} : vector<1x256xf32>, vector<256x128xf32>, vector<1x128xf32> -> vector<1x128xf32>
    %c0_15 = arith.constant 0 : index
    %18 = memref.load %arg7[%c0_15] : memref<1xf32, #tpu.memory_space<smem>>
    %19 = vector.broadcast %18 : f32 to vector<1x128xf32>
    %20 = arith.addf %17, %19 : vector<1x128xf32>
    %c0_16 = arith.constant 0 : index
    %c0_17 = arith.constant 0 : index
    %21 = vector.load %arg8[%c0_16, %c0_17] : memref<1x128xf32, #tpu.memory_space<vmem>>, vector<1x128xf32>
    tpu.vector_store %arg8[%c0_16, %c0_17], %20 {strides = array<i32>} : memref<1x128xf32, #tpu.memory_space<vmem>>, vector<1x128xf32>,
    return
  }
  func.func @transform_0(%arg0: i32) -> (i32, i32) {
    %c0_i32 = arith.constant 0 : i32
    %c0_i32_0 = arith.constant 0 : i32
    return %c0_i32, %arg0 : i32, i32
  }
  func.func @transform_1(%arg0: i32) -> (i32, i32) {
    %c0_i32 = arith.constant 0 : i32
    %c0_i32_0 = arith.constant 0 : i32
    %c0_i32_1 = arith.constant 0 : i32
    return %c0_i32, %c0_i32_0 : i32, i32
  }
  func.func @transform_2(%arg0: i32) -> (i32, i32) {
    %c0_i32 = arith.constant 0 : i32
    %c0_i32_0 = arith.constant 0 : i32
    %c0_i32_1 = arith.constant 0 : i32
    return %c0_i32, %c0_i32_0 : i32, i32
  }
  func.func @transform_3(%arg0: i32) -> (i32, i32) {
    %c0_i32 = arith.constant 0 : i32
    %c0_i32_0 = arith.constant 0 : i32
    %c0_i32_1 = arith.constant 0 : i32
    return %c0_i32, %c0_i32_0 : i32, i32
  }
  func.func @transform_4(%arg0: i32) -> (i32, i32) {
    %c0_i32 = arith.constant 0 : i32
    %c0_i32_0 = arith.constant 0 : i32
    %c0_i32_1 = arith.constant 0 : i32
    return %c0_i32, %c0_i32_0 : i32, i32
  }
  func.func @transform_5(%arg0: i32) -> (i32, i32) {
    %c0_i32 = arith.constant 0 : i32
    %c0_i32_0 = arith.constant 0 : i32
    %c0_i32_1 = arith.constant 0 : i32
    return %c0_i32, %c0_i32_0 : i32, i32
  }
  func.func @transform_6(%arg0: i32) -> i32 {
    %c0_i32 = arith.constant 0 : i32
    %c0_i32_0 = arith.constant 0 : i32
    return %c0_i32 : i32
  }
  func.func @transform_7(%arg0: i32) -> (i32, i32) {
    %c0_i32 = arith.constant 0 : i32
    %c0_i32_0 = arith.constant 0 : i32
    return %c0_i32, %arg0 : i32, i32
  }
}

</mosaic_0001>

<bundles_post_ra>
// kernel: qnet_forward.1
= control target key start
LH: loop header
LB: loop body
LE: loop exit
PB: predicated region body
PF: predicated region fallthrough
CT: control target
= control target key end

     0   :  { %s2670_s0 = inlined_call_operand.vmem [shape: bf16[16,384], index: 0, kind: input, shape index: {}]   ;;  %s2671_s1 = inlined_call_operand.vmem [shape: bf16[256,16], index: 1, kind: input, shape index: {}]   ;;  %s2672_s2 = inlined_call_operand.vmem [shape: f32[256,1], index: 2, kind: input, shape index: {}]   ;;  %s2673_s3 = inlined_call_operand.vmem [shape: bf16[256,256], index: 3, kind: input, shape index: {}]   ;;  %s2674_s4 = inlined_call_operand.vmem [shape: f32[256,1], index: 4, kind: input, shape index: {}]   ;;  %s2675_s5 = inlined_call_operand.vmem [shape: f32[1,256], index: 5, kind: input, shape index: {}]   ;;  %s2676_s6 = inlined_call_operand.<no memory space> [shape: f32[1], index: 6, kind: input, shape index: {}]   ;;  %s2677_s7 = inlined_call_operand.vmem [shape: f32[1,384], index: 7, kind: output, shape index: {}]  }
   0x1   :  { %12 = sst [smem:[#allocation2]] %s2676_s6 }
   0x2   :  { %s2088_s26 = smov 0   ;;  %s2090_s27 = smov 0  }
   0x3   :  { %s2092_s28 = smov 0  }
   0x4 LB: > { %s1607_s6 = sadd.s32 4294967295, %s2042_s28   ;;  %s2105_s29 = sadd.s32 1, %s2042_s28   ;;  %s2042_s28 = sphi %s2092_s28, %s2680_s28   ;;  %s2038_s27 = sphi %s2090_s27, %s2679_s27   ;;  %s2034_s26 = sphi %s2088_s26, %s2678_s26  }
   0x5   : > { %s22_s30 = ssub.s32 %s2042_s28, %s2105_s29  ;;  %s25_s8 = sadd.s32 1, %s2038_s27 }
   0x6   : > { %p23_p0 = scmp.eq.s32.totalorder %s22_s30, 0  ;;  %p32_p1 = scmp.ne.s32.totalorder %s2038_s27, %s2034_s26 }
   0x7   : > { %p33_p2 = scmp.eq.s32.totalorder %s2042_s28, 0  ;;  %p1610_p4 = scmp.ge.s32.totalorder %s2042_s28, 3 }
   0x8   : > { %s2114_s9 = scalar_select %p23_p0, %s2038_s27, %s25_s8  }
   0x9   : > { %p34_p3 = por %p33_p2, %p32_p1  ;;  %228 = sbr.rel (%p1610_p4) target bundleno = 23 (0x17), region = 40 }
  0x10   : > { %231 = sbr.rel (!%p34_p3) target bundleno = 23 (0x17), region = 44  ;;  %s233_s10 = sand.u32 (%p34_p3), 1, %s2038_s27  }
  0x11   : > { %s1612_s11 = sshll.u32 (%p34_p3), %s2042_s28, 2  ;;  %s1611_s12 = sshll.u32 (%p34_p3), %s233_s10, 3 }
  0x12   : > { %s237_s15 = scalar_lea.vmem (%p34_p3), %s2670_s0, %s1612_s11  ;;  %s235_s16 = scalar_lea.vmem (%p34_p3), [#allocation3], %s1611_s12 }
  0x13   : > { %v253_v0 = vld [vmem:[%s237_s15] sm:$0xf] (%p34_p3)  ;;  %v255_v1 = vld [vmem:[%s237_s15 + $0xc] sm:$0xf] (%p34_p3) }
  0x14   : > { %254 = vst [vmem:[%s235_s16] sm:$0xf] (%p34_p3), %v253_v0  ;;  %256 = vst [vmem:[%s235_s16 + $0x4] sm:$0xf] (%p34_p3), %v255_v1 }
  0x17 PF: > { %p1613_p5 = scmp.ge.s32.totalorder %s2042_s28, 1  ;;  %p282_p6 = scmp.lt.s32.totalorder %s2042_s28, 4 }
  0x19   : > { %p283_p7 = pnand %p1613_p5, %p282_p6 }
  0x1a   : > { %v372_v2 = vld [vmem:[%s2672_s2 + $0x80] sm:$0xff] (!%p283_p7)  ;;  %s289_s21 = sand.u32 (!%p283_p7), 1, %s2034_s26   ;;  %v2044_v4 = vmov (!%p283_p7), 0   ;;  %vm634_vm0 = vcmask (!%p283_p7), 130048   ;;  %v373_v5 = vld [vmem:[%s2672_s2 + $0x88] sm:$0xff] (!%p283_p7)  ;;  %v374_v9 = vld [vmem:[%s2672_s2 + $0x90] sm:$0xff] (!%p283_p7) }
  0x1b   : > { %286 = sbr.rel (%p283_p7) target bundleno = 844 (0x34c), region = 85  ;;  %v356_v3 = vld [vmem:[%s2672_s2] sm:$0xff] (!%p283_p7)  ;;  %1954 = vset.pattern.permute.xlu1 (!%p283_p7), %v2044_v4  ;;  %1953 = vset.pattern.permute.xlu0 (!%p283_p7), %v2044_v4  ;;  %s1614_s22 = sshll.u32 (!%p283_p7), %s289_s21, 3  ;;  %v357_v6 = vld [vmem:[%s2672_s2 + $0x8] sm:$0xff] (!%p283_p7)  ;;  %v375_v10 = vld [vmem:[%s2672_s2 + $0x98] sm:$0xff] (!%p283_p7) }
  0x1c   : > { %470 = vperm.xlu0 (!%p283_p7), %1953, %v372_v2   ;;  %390 = vperm.xlu1 (!%p283_p7), %1954, %v356_v3   ;;  %v1956_v7 = vld [vmem:[%s2671_s1] sm:$0xff] (!%p283_p7)   ;;  %s291_s26 = scalar_lea.vmem (!%p283_p7), [#allocation3], %s1614_s22  ;;  %v1957_v11 = vld [vmem:[%s2671_s1 + $0x8] sm:$0xff] (!%p283_p7)   ;;  %v1958_v12 = vld [vmem:[%s2671_s1 + $0x10] sm:$0xff] (!%p283_p7)   ;;  %s1470_s18 = sld [smem:[#allocation2]] (!%p283_p7) }
  0x1d   : > { %v1955_v8 = vld [vmem:[%s291_s26] sm:$0xff] (!%p283_p7)   ;;  %1848 = vmatprep.mubr.msk.bf16.mxu0 (!%p283_p7), %vm634_vm0, %v1956_v7  ;;  %v358_v13 = vld [vmem:[%s2672_s2 + $0x10] sm:$0xff] (!%p283_p7)  ;;  %v359_v14 = vld [vmem:[%s2672_s2 + $0x18] sm:$0xff] (!%p283_p7)  ;;  %p318_p8 = scmp.lt.s32.totalorder (!%p283_p7), %s1607_s6, 2 }
  0x1e   : > { %1846 = vmatprep.subr.bf16.mxu0 (!%p283_p7), %v1955_v8  ;;  %v376_v15 = vld [vmem:[%s2672_s2 + $0xa0] sm:$0xff] (!%p283_p7)  ;;  %v377_v16 = vld [vmem:[%s2672_s2 + $0xa8] sm:$0xff] (!%p283_p7)  ;;  %v1959_v17 = vld [vmem:[%s2671_s1 + $0x18] sm:$0xff] (!%p283_p7)  }
  0x1f   : > { %1847 = vmatpush3.bf16.msra.mxu0 (!%p283_p7), %v1955_v8  ;;  %v1960_v18 = vld [vmem:[%s2671_s1 + $0x20] sm:$0xff] (!%p283_p7)   ;;  %v361_v20 = vld [vmem:[%s2672_s2 + $0x28] sm:$0xff] (!%p283_p7)  ;;  %v378_v21 = vld [vmem:[%s2672_s2 + $0xb0] sm:$0xff] (!%p283_p7) }
  0x20   : > { %475 = vperm.xlu0 (!%p283_p7), %1953, %v373_v5   ;;  %395 = vperm.xlu1 (!%p283_p7), %1954, %v357_v6   ;;  %v360_v19 = vld [vmem:[%s2672_s2 + $0x20] sm:$0xff] (!%p283_p7)  ;;  %v379_v22 = vld [vmem:[%s2672_s2 + $0xb8] sm:$0xff] (!%p283_p7)  ;;  %v1961_v23 = vld [vmem:[%s2671_s1 + $0x28] sm:$0xff] (!%p283_p7)  }
  0x21   : > { %v1962_v24 = vld [vmem:[%s2671_s1 + $0x30] sm:$0xff] (!%p283_p7)   ;;  %v363_v26 = vld [vmem:[%s2672_s2 + $0x38] sm:$0xff] (!%p283_p7)  ;;  %v380_v27 = vld [vmem:[%s2672_s2 + $0xc0] sm:$0xff] (!%p283_p7) }
  0x22   : > { %1849 = vmatmul.mubr.msk.bf16.vlgmr.msra.gmra.mrb[0].mxu0 %vm634_vm0, %v1957_v11  ;;  %v362_v25 = vld [vmem:[%s2672_s2 + $0x30] sm:$0xff]  ;;  %v381_v28 = vld [vmem:[%s2672_s2 + $0xc8] sm:$0xff]  ;;  %v1963_v29 = vld [vmem:[%s2671_s1 + $0x38] sm:$0xff]   ;;  %s2682_s6 = smov (!%p318_p8, %s1607_s6), 2 }
  0x23   : > { %1852 = vmatprep.mubr.msk.bf16.mxu0 %vm634_vm0, %v1958_v12  ;;  %v1964_v30 = vld [vmem:[%s2671_s1 + $0x40] sm:$0xff]   ;;  %v365_v32 = vld [vmem:[%s2672_s2 + $0x48] sm:$0xff]  ;;  %v382_v33 = vld [vmem:[%s2672_s2 + $0xd0] sm:$0xff]  ;;  %s320_s21 = scalar_lea.vmem %s2677_s7, %s2682_s6 }
  0x24   : > { %480 = vperm.xlu0 %1953, %v374_v9   ;;  %485 = vperm.xlu1 %1954, %v375_v10   ;;  %v364_v31 = vld [vmem:[%s2672_s2 + $0x40] sm:$0xff]  ;;  %v383_v34 = vld [vmem:[%s2672_s2 + $0xd8] sm:$0xff]  ;;  %v1965_v35 = vld [vmem:[%s2671_s1 + $0x48] sm:$0xff]  }
  0x25   : > { %v1966_v36 = vld [vmem:[%s2671_s1 + $0x50] sm:$0xff]   ;;  %v367_v38 = vld [vmem:[%s2672_s2 + $0x58] sm:$0xff]  ;;  %v384_v39 = vld [vmem:[%s2672_s2 + $0xe0] sm:$0xff] }
  0x26   : > { %v366_v37 = vld [vmem:[%s2672_s2 + $0x50] sm:$0xff]  ;;  %v385_v40 = vld [vmem:[%s2672_s2 + $0xe8] sm:$0xff]  ;;  %v1967_v41 = vld [vmem:[%s2671_s1 + $0x58] sm:$0xff]  }
  0x27   : > { %v1968_v42 = vld [vmem:[%s2671_s1 + $0x60] sm:$0xff]   ;;  %v369_v44 = vld [vmem:[%s2672_s2 + $0x68] sm:$0xff]  ;;  %v386_v45 = vld [vmem:[%s2672_s2 + $0xf0] sm:$0xff] }
  0x28   : > { %400 = vperm.xlu0 %1953, %v358_v13   ;;  %405 = vperm.xlu1 %1954, %v359_v14   ;;  %v368_v43 = vld [vmem:[%s2672_s2 + $0x60] sm:$0xff]  ;;  %v387_v46 = vld [vmem:[%s2672_s2 + $0xf8] sm:$0xff]  ;;  %v1969_v47 = vld [vmem:[%s2671_s1 + $0x68] sm:$0xff]  }
  0x29   : > { %v1970_v48 = vld [vmem:[%s2671_s1 + $0x70] sm:$0xff]   ;;  %v371_v50 = vld [vmem:[%s2672_s2 + $0x78] sm:$0xff]  ;;  %v940_v51 = vld [vmem:[%s2674_s4 + $0x80] sm:$0xff] }
  0x2a   : > { %1853 = vmatmul.mubr.msk.bf16.gmra.mrb[4].mxu0 %vm634_vm0, %v1959_v17  ;;  %v370_v49 = vld [vmem:[%s2672_s2 + $0x70] sm:$0xff]  ;;  %v941_v52 = vld [vmem:[%s2674_s4 + $0x88] sm:$0xff]  ;;  %v1971_v53 = vld [vmem:[%s2671_s1 + $0x78] sm:$0xff]  }
  0x2b   : > { %1856 = vmatprep.mubr.msk.bf16.mxu0 %vm634_vm0, %v1960_v18  ;;  %v924_v54 = vld [vmem:[%s2674_s4] sm:$0xff]  ;;  %v925_v55 = vld [vmem:[%s2674_s4 + $0x8] sm:$0xff]  ;;  %v942_v56 = vld [vmem:[%s2674_s4 + $0x90] sm:$0xff] }
  0x2c   : > { %490 = vperm.xlu0 %1953, %v376_v15   ;;  %495 = vperm.xlu1 %1954, %v377_v16   ;;  %v943_v57 = vld [vmem:[%s2674_s4 + $0x98] sm:$0xff]  ;;  %v926_v58 = vld [vmem:[%s2674_s4 + $0x10] sm:$0xff]  ;;  %v944_v60 = vld [vmem:[%s2674_s4 + $0xa0] sm:$0xff] }
  0x2d   : > { %v927_v59 = vld [vmem:[%s2674_s4 + $0x18] sm:$0xff]  ;;  %v945_v61 = vld [vmem:[%s2674_s4 + $0xa8] sm:$0xff]  ;;  %v928_v62 = vld [vmem:[%s2674_s4 + $0x20] sm:$0xff] }
  0x2e   : > { %v929_v63 = vld [vmem:[%s2674_s4 + $0x28] sm:$0xff]  ;;  %v946_v0 = vld [vmem:[%s2674_s4 + $0xb0] sm:$0xff]  ;;  %v947_v1 = vld [vmem:[%s2674_s4 + $0xb8] sm:$0xff] }
  0x2f   : > { %v930_v2 = vld [vmem:[%s2674_s4 + $0x30] sm:$0xff]  ;;  %v931_v3 = vld [vmem:[%s2674_s4 + $0x38] sm:$0xff]  ;;  %v948_v4 = vld [vmem:[%s2674_s4 + $0xc0] sm:$0xff] }
  0x30   : > { %410 = vperm.xlu0 %1953, %v360_v19   ;;  %415 = vperm.xlu1 %1954, %v361_v20   ;;  %v949_v5 = vld [vmem:[%s2674_s4 + $0xc8] sm:$0xff]  ;;  %v932_v6 = vld [vmem:[%s2674_s4 + $0x40] sm:$0xff]  ;;  %v950_v8 = vld [vmem:[%s2674_s4 + $0xd0] sm:$0xff] }
  0x31   : > { %v933_v7 = vld [vmem:[%s2674_s4 + $0x48] sm:$0xff]  ;;  %v951_v9 = vld [vmem:[%s2674_s4 + $0xd8] sm:$0xff]  ;;  %v934_v10 = vld [vmem:[%s2674_s4 + $0x50] sm:$0xff] }
  0x32   : > { %1857 = vmatmul.mubr.msk.bf16.gmra.mrb[8].mxu0 %vm634_vm0, %v1961_v23  ;;  %v935_v11 = vld [vmem:[%s2674_s4 + $0x58] sm:$0xff]  ;;  %v952_v12 = vld [vmem:[%s2674_s4 + $0xe0] sm:$0xff]  ;;  %v953_v13 = vld [vmem:[%s2674_s4 + $0xe8] sm:$0xff] }
  0x33   : > { %1860 = vmatprep.mubr.msk.bf16.mxu0 %vm634_vm0, %v1962_v24  ;;  %v936_v14 = vld [vmem:[%s2674_s4 + $0x60] sm:$0xff]  ;;  %v937_v15 = vld [vmem:[%s2674_s4 + $0x68] sm:$0xff]  ;;  %v954_v16 = vld [vmem:[%s2674_s4 + $0xf0] sm:$0xff] }
  0x34   : > { %500 = vperm.xlu0 %1953, %v378_v21   ;;  %505 = vperm.xlu1 %1954, %v379_v22   ;;  %v955_v17 = vld [vmem:[%s2674_s4 + $0xf8] sm:$0xff]  ;;  %v938_v18 = vld [vmem:[%s2674_s4 + $0x70] sm:$0xff]  ;;  %v1974_v24 = vld [vmem:[%s2673_s3 + $0x4] ss:$8 sps:$4 sm:$0xff]  }
  0x35   : > { %v939_v19 = vld [vmem:[%s2674_s4 + $0x78] sm:$0xff] }
  0x38   : > { %420 = vperm.xlu0 %1953, %v362_v25   ;;  %425 = vperm.xlu1 %1954, %v363_v26   ;;  %v1977_v25 = vld [vmem:[%s2673_s3 + $0x54] ss:$8 sps:$4 sm:$0xff]  }
  0x39   : > { %1348 = vmatprep.mubr.bf16.mxu1 %v1977_v25 }
  0x3a   : > { %1861 = vmatmul.mubr.msk.bf16.gmra.mrb[12].mxu0 %vm634_vm0, %v1963_v29 }
  0x3b   : > { %1864 = vmatprep.mubr.msk.bf16.mxu0 %vm634_vm0, %v1964_v30 }
  0x3c   : > { %510 = vperm.xlu0 %1953, %v380_v27   ;;  %515 = vperm.xlu1 %1954, %v381_v28  }
  0x40   : > { %430 = vperm.xlu0 %1953, %v364_v31   ;;  %435 = vperm.xlu1 %1954, %v365_v32  }
  0x42   : > { %1865 = vmatmul.mubr.msk.bf16.gmra.mrb[16].mxu0 %vm634_vm0, %v1965_v35 }
  0x43   : > { %1868 = vmatprep.mubr.msk.bf16.mxu0 %vm634_vm0, %v1966_v36 }
  0x44   : > { %520 = vperm.xlu0 %1953, %v382_v33   ;;  %525 = vperm.xlu1 %1954, %v383_v34  }
  0x48   : > { %440 = vperm.xlu0 %1953, %v366_v37   ;;  %445 = vperm.xlu1 %1954, %v367_v38  }
  0x4a   : > { %1869 = vmatmul.mubr.msk.bf16.gmra.mrb[20].mxu0 %vm634_vm0, %v1967_v41 }
  0x4b   : > { %1872 = vmatprep.mubr.msk.bf16.mxu0 %vm634_vm0, %v1968_v42 }
  0x4c   : > { %530 = vperm.xlu0 %1953, %v384_v39   ;;  %535 = vperm.xlu1 %1954, %v385_v40  }
  0x50   : > { %450 = vperm.xlu0 %1953, %v368_v43   ;;  %455 = vperm.xlu1 %1954, %v369_v44  }
  0x52   : > { %1873 = vmatmul.mubr.msk.bf16.gmra.mrb[24].mxu0 %vm634_vm0, %v1969_v47 }
  0x53   : > { %1876 = vmatprep.mubr.msk.bf16.mxu0 %vm634_vm0, %v1970_v48 }
  0x54   : > { %540 = vperm.xlu0 %1953, %v386_v45   ;;  %545 = vperm.xlu1 %1954, %v387_v46  }
  0x58   : > { %460 = vperm.xlu0 %1953, %v370_v49   ;;  %465 = vperm.xlu1 %1954, %v371_v50  }
  0x5a   : > { %1877 = vmatmul.mubr.msk.bf16.gmra.mrb[28].mxu0 %vm634_vm0, %v1971_v53 }
  0x5b   : > { %1308 = vmatprep.mubr.bf16.mxu0 %v1974_v24 }
  0x5c   : > { %1038 = vperm.xlu0 %1953, %v940_v51   ;;  %1043 = vperm.xlu1 %1954, %v941_v52  }
  0x60   : > { %958 = vperm.xlu0 %1953, %v924_v54   ;;  %963 = vperm.xlu1 %1954, %v925_v55  }
  0x64   : > { %1048 = vperm.xlu0 %1953, %v942_v56   ;;  %1053 = vperm.xlu1 %1954, %v943_v57  }
  0x68   : > { %968 = vperm.xlu0 %1953, %v926_v58   ;;  %973 = vperm.xlu1 %1954, %v927_v59  }
  0x6c   : > { %1058 = vperm.xlu0 %1953, %v944_v60   ;;  %1063 = vperm.xlu1 %1954, %v945_v61  }
  0x70   : > { %978 = vperm.xlu0 %1953, %v928_v62   ;;  %983 = vperm.xlu1 %1954, %v929_v63  }
  0x74   : > { %1068 = vperm.xlu0 %1953, %v946_v0   ;;  %1073 = vperm.xlu1 %1954, %v947_v1  }
  0x78   : > { %988 = vperm.xlu0 %1953, %v930_v2   ;;  %993 = vperm.xlu1 %1954, %v931_v3  }
  0x7c   : > { %1078 = vperm.xlu0 %1953, %v948_v4   ;;  %1083 = vperm.xlu1 %1954, %v949_v5  }
  0x80   : > { %998 = vperm.xlu0 %1953, %v932_v6   ;;  %1003 = vperm.xlu1 %1954, %v933_v7  }
  0x84   : > { %1088 = vperm.xlu0 %1953, %v950_v8   ;;  %1093 = vperm.xlu1 %1954, %v951_v9  }
  0x88   : > { %1008 = vperm.xlu0 %1953, %v934_v10   ;;  %1013 = vperm.xlu1 %1954, %v935_v11  }
  0x8c   : > { %1098 = vperm.xlu0 %1953, %v952_v12   ;;  %1103 = vperm.xlu1 %1954, %v953_v13  }
  0x90   : > { %1018 = vperm.xlu0 %1953, %v936_v14   ;;  %1023 = vperm.xlu1 %1954, %v937_v15  }
  0x94   : > { %1108 = vperm.xlu0 %1953, %v954_v16   ;;  %1113 = vperm.xlu1 %1954, %v955_v17  }
  0x98   : > { %1028 = vperm.xlu0 %1953, %v938_v18   ;;  %1033 = vperm.xlu1 %1954, %v939_v19  }
  0x9b   : > { %v2381_v20 = vpop.permute.xlu0 %470  ;;  %v391_v21 = vpop.permute.xlu1 %390 }
  0x9f   : > { %v2383_v22 = vpop.permute.xlu0 %475  ;;  %v396_v23 = vpop.permute.xlu1 %395 }
  0xa3   : > { %v2391_v26 = vpop.permute.xlu0 %480  ;;  %v2393_v27 = vpop.permute.xlu1 %485 }
  0xa7   : > { %v401_v28 = vpop.permute.xlu0 %400  ;;  %v406_v29 = vpop.permute.xlu1 %405 }
  0xab   : > { %v2395_v30 = vpop.permute.xlu0 %490  ;;  %v2397_v31 = vpop.permute.xlu1 %495 }
  0xaf   : > { %v411_v32 = vpop.permute.xlu0 %410  ;;  %v416_v33 = vpop.permute.xlu1 %415 }
  0xb3   : > { %v2399_v34 = vpop.permute.xlu0 %500  ;;  %v2401_v35 = vpop.permute.xlu1 %505 }
  0xb7   : > { %v421_v36 = vpop.permute.xlu0 %420  ;;  %v426_v37 = vpop.permute.xlu1 %425 }
  0xbb   : > { %v2403_v38 = vpop.permute.xlu0 %510  ;;  %v2405_v39 = vpop.permute.xlu1 %515 }
  0xbf   : > { %v431_v40 = vpop.permute.xlu0 %430  ;;  %v436_v41 = vpop.permute.xlu1 %435 }
  0xc3   : > { %v2407_v42 = vpop.permute.xlu0 %520  ;;  %v2409_v43 = vpop.permute.xlu1 %525 }
  0xc7   : > { %v441_v44 = vpop.permute.xlu0 %440  ;;  %v446_v48 = vpop.permute.xlu1 %445 }
  0xcb   : > { %v2411_v56 = vpop.permute.xlu0 %530  ;;  %v2415_v60 = vpop.permute.xlu1 %535 }
  0xcf   : > { %v451_v5 = vpop.permute.xlu0 %450  ;;  %v456_v9 = vpop.permute.xlu1 %455 }
  0xd3   : > { %v2423_v17 = vpop.permute.xlu0 %540  ;;  %v2425_v24 = vpop.permute.xlu1 %545 }
  0xf5   : > { %v1850_v45 = vpop.f32.mrb[0].mxu0 }
  0xf6   : > { %v726_v46 = vadd.f32 %v1850_v45, %v401_v28  ;;  %v717_v47 = vpop.f32.mrb[1].mxu0 }
  0xf7   : > { %v718_v49 = vadd.f32 %v717_v47, %v391_v21  ;;  %v1851_v50 = vpop.f32.mrb[2].mxu0 }
  0xf8   : > { %v729_v51 = vadd.f32 %v1851_v50, %v406_v29  ;;  %v720_v52 = vpop.f32.mrb[3].mxu0  ;;  %v846_v54 = vmax.f32 %v726_v46, 0.0 }
  0xf9   : > { %v721_v53 = vadd.f32 %v720_v52, %v396_v23  ;;  %v844_v57 = vmax.f32 %v718_v49, 0.0  ;;  %v466_v49 = vpop.permute.xlu1 %465 }
  0xfa   : > { %v847_v55 = vmax.f32 %v729_v51, 0.0 }
  0xfb   : > { %v845_v58 = vmax.f32 %v721_v53, 0.0 }
  0xfc   : > { %v2413_v59 = vpack.c.bf16 %v847_v55, %v846_v54 }
  0xfd   : > { %v2417_v61 = vpack.c.bf16 %v845_v58, %v844_v57  ;;  %v1854_v62 = vpop.f32.mrb[4].mxu0 }
  0xfe   : > { %v742_v63 = vadd.f32 %v1854_v62, %v421_v36  ;;  %v733_v0 = vpop.f32.mrb[5].mxu0 }
  0xff   : > { %v734_v1 = vadd.f32 %v733_v0, %v411_v32  ;;  %v1855_v2 = vpop.f32.mrb[6].mxu0 }
 0x100   : > { %v745_v3 = vadd.f32 %v1855_v2, %v426_v37  ;;  %v736_v4 = vpop.f32.mrb[7].mxu0  ;;  %v850_v7 = vmax.f32 %v742_v63, 0.0  ;;  %v461_v37 = vpop.permute.xlu0 %460 }
 0x101   : > { %v737_v6 = vadd.f32 %v736_v4, %v416_v33  ;;  %v848_v10 = vmax.f32 %v734_v1, 0.0 }
 0x102   : > { %v851_v8 = vmax.f32 %v745_v3, 0.0 }
 0x103   : > { %v849_v11 = vmax.f32 %v737_v6, 0.0 }
 0x104   : > { %v2419_v12 = vpack.c.bf16 %v851_v8, %v850_v7 }
 0x105   : > { %v2421_v13 = vpack.c.bf16 %v849_v11, %v848_v10  ;;  %v1858_v14 = vpop.f32.mrb[8].mxu0 }
 0x106   : > { %v758_v15 = vadd.f32 %v1858_v14, %v441_v44  ;;  %v749_v16 = vpop.f32.mrb[9].mxu0 }
 0x107   : > { %v750_v18 = vadd.f32 %v749_v16, %v431_v40  ;;  %v1859_v19 = vpop.f32.mrb[10].mxu0 }
 0x108   : > { %v761_v21 = vadd.f32 %v1859_v19, %v446_v48  ;;  %v752_v23 = vpop.f32.mrb[11].mxu0  ;;  %v854_v28 = vmax.f32 %v758_v15, 0.0 }
 0x109   : > { %v753_v25 = vadd.f32 %v752_v23, %v436_v41  ;;  %v852_v32 = vmax.f32 %v750_v18, 0.0 }
 0x10a   : > { %v855_v29 = vmax.f32 %v761_v21, 0.0 }
 0x10b   : > { %v853_v33 = vmax.f32 %v753_v25, 0.0 }
 0x10c   : > { %v2427_v36 = vpack.c.bf16 %v855_v29, %v854_v28 }
 0x10d   : > { %v2429_v45 = vpack.c.bf16 %v853_v33, %v852_v32  ;;  %v1862_v44 = vpop.f32.mrb[12].mxu0 }
 0x10e   : > { %v774_v46 = vadd.f32 %v1862_v44, %v461_v37  ;;  %v765_v47 = vpop.f32.mrb[13].mxu0 }
 0x10f   : > { %v766_v40 = vadd.f32 %v765_v47, %v451_v5  ;;  %v1863_v50 = vpop.f32.mrb[14].mxu0 }
 0x110   : > { %v777_v48 = vadd.f32 %v1863_v50, %v466_v49  ;;  %v768_v51 = vpop.f32.mrb[15].mxu0  ;;  %v858_v53 = vmax.f32 %v774_v46, 0.0 }
 0x111   : > { %v769_v52 = vadd.f32 %v768_v51, %v456_v9  ;;  %v856_v54 = vmax.f32 %v766_v40, 0.0 }
 0x112   : > { %v859_v41 = vmax.f32 %v777_v48, 0.0 }
 0x113   : > { %v857_v55 = vmax.f32 %v769_v52, 0.0 }
 0x114   : > { %v2431_v57 = vpack.c.bf16 %v859_v41, %v858_v53 }
 0x115   : > { %v2433_v58 = vpack.c.bf16 %v857_v55, %v856_v54  ;;  %v1866_v62 = vpop.f32.mrb[16].mxu0  ;;  %v1982_v54 = vld [vmem:[%s2673_s3 + $0x10] ss:$8 sps:$4 sm:$0xff]   ;;  %v1983_v55 = vld [vmem:[%s2673_s3 + $0x60] ss:$8 sps:$4 sm:$0xff]  }
 0x116   : > { %v790_v63 = vadd.f32 %v1866_v62, %v2391_v26  ;;  %v781_v0 = vpop.f32.mrb[17].mxu0  ;;  %v1988_v62 = vld [vmem:[%s2673_s3 + $0x20] ss:$8 sps:$4 sm:$0xff]  }
 0x117   : > { %v782_v1 = vadd.f32 %v781_v0, %v2381_v20  ;;  %v1867_v2 = vpop.f32.mrb[18].mxu0  ;;  %v1990_v0 = vld [vmem:[%s2673_s3 + $0x34] ss:$8 sps:$4 sm:$0xff]  }
 0x118   : > { %v793_v3 = vadd.f32 %v1867_v2, %v2393_v27  ;;  %v784_v4 = vpop.f32.mrb[19].mxu0  ;;  %v862_v6 = vmax.f32 %v790_v63, 0.0  ;;  %v1989_v63 = vld [vmem:[%s2673_s3 + $0x70] ss:$8 sps:$4 sm:$0xff]  }
 0x119   : > { %v785_v5 = vadd.f32 %v784_v4, %v2383_v22  ;;  %v860_v8 = vmax.f32 %v782_v1, 0.0  ;;  %v1992_v1 = vld [vmem:[%s2673_s3 + $0x84] ss:$8 sps:$4 sm:$0xff]   ;;  %v1994_v2 = vld [vmem:[%s2673_s3 + $0x30] ss:$8 sps:$4 sm:$0xff]  }
 0x11a   : > { %v863_v7 = vmax.f32 %v793_v3, 0.0  ;;  %v1995_v3 = vld [vmem:[%s2673_s3 + $0x80] ss:$8 sps:$4 sm:$0xff]   ;;  %v1996_v4 = vld [vmem:[%s2673_s3 + $0x44] ss:$8 sps:$4 sm:$0xff]  }
 0x11b   : > { %v861_v9 = vmax.f32 %v785_v5, 0.0  ;;  %v1998_v5 = vld [vmem:[%s2673_s3 + $0x94] ss:$8 sps:$4 sm:$0xff]  }
 0x11c   : > { %v917_v10 = vpack.c.bf16 %v863_v7, %v862_v6  ;;  %v2000_v6 = vld [vmem:[%s2673_s3 + $0x40] ss:$8 sps:$4 sm:$0xff]   ;;  %v2001_v7 = vld [vmem:[%s2673_s3 + $0x90] ss:$8 sps:$4 sm:$0xff]  }
 0x11d   : > { %v916_v11 = vpack.c.bf16 %v861_v9, %v860_v8  ;;  %v1870_v14 = vpop.f32.mrb[20].mxu0  ;;  %v2002_v8 = vld [vmem:[%s2673_s3 + $0xa4] ss:$8 sps:$4 sm:$0xff]   ;;  %v2004_v9 = vld [vmem:[%s2673_s3 + $0xa0] ss:$8 sps:$4 sm:$0xff]  }
 0x11e   : > { %v806_v15 = vadd.f32 %v1870_v14, %v2399_v34  ;;  %v797_v16 = vpop.f32.mrb[21].mxu0  ;;  %v2008_v14 = vld [vmem:[%s2673_s3 + $0xc4] ss:$8 sps:$4 sm:$0xff]  }
 0x11f   : > { %v798_v26 = vadd.f32 %v797_v16, %v2395_v30  ;;  %v1871_v18 = vpop.f32.mrb[22].mxu0  ;;  %1699 = vmatprep.subr.bf16.mxu0 %v916_v11  ;;  %1912 = vmatprep.subr.bf16.mxu1 %v916_v11  ;;  %v2007_v11 = vld [vmem:[%s2673_s3 + $0xb0] ss:$8 sps:$4 sm:$0xff]   ;;  %v2011_v16 = vld [vmem:[%s2673_s3 + $0xd4] ss:$8 sps:$4 sm:$0xff]  }
 0x120   : > { %v809_v20 = vadd.f32 %v1871_v18, %v2401_v35  ;;  %v800_v27 = vpop.f32.mrb[23].mxu0  ;;  %1700 = vmatpush3.bf16.msra.mxu0 %v2417_v61  ;;  %1920 = vmatpush3.bf16.msra.mxu1 %v2417_v61  ;;  %v866_v19 = vmax.f32 %v806_v15, 0.0  ;;  %v2010_v15 = vld [vmem:[%s2673_s3 + $0xc0] ss:$8 sps:$4 sm:$0xff]   ;;  %v2014_v18 = vld [vmem:[%s2673_s3 + $0xe4] ss:$8 sps:$4 sm:$0xff]  }
 0x121   : > { %v801_v22 = vadd.f32 %v800_v27, %v2397_v31  ;;  %1701 = vmatprep.subr.bf16.mxu0 %v917_v10  ;;  %1913 = vmatprep.subr.bf16.mxu1 %v917_v10  ;;  %v864_v34 = vmax.f32 %v798_v26, 0.0  ;;  %v2005_v10 = vld [vmem:[%s2673_s3 + $0xb4] ss:$8 sps:$4 sm:$0xff]   ;;  %v2013_v26 = vld [vmem:[%s2673_s3 + $0xd0] ss:$8 sps:$4 sm:$0xff]  }
 0x122   : > { %v867_v21 = vmax.f32 %v809_v20, 0.0  ;;  %v2016_v20 = vld [vmem:[%s2673_s3 + $0xe0] ss:$8 sps:$4 sm:$0xff]   ;;  %v2017_v27 = vld [vmem:[%s2673_s3 + $0xf4] ss:$8 sps:$4 sm:$0xff]  }
 0x123   : > { %v865_v23 = vmax.f32 %v801_v22, 0.0  ;;  %v2019_v22 = vld [vmem:[%s2673_s3 + $0xf0] ss:$8 sps:$4 sm:$0xff]  }
 0x124   : > { %v919_v25 = vpack.c.bf16 %v867_v21, %v866_v19  ;;  %1702 = vmatpush3.bf16.msra.mxu0 %v2413_v59  ;;  %1921 = vmatpush3.bf16.msra.mxu1 %v2413_v59  ;;  %v2557_v19 = vpop.permute.xlu0 %1038  ;;  %v2559_v21 = vpop.permute.xlu1 %1043 }
 0x125   : > { %v918_v30 = vpack.c.bf16 %v865_v23, %v864_v34  ;;  %v1874_v35 = vpop.f32.mrb[24].mxu0 }
 0x126   : > { %v822_v28 = vadd.f32 %v1874_v35, %v2407_v42  ;;  %v813_v29 = vpop.f32.mrb[25].mxu0 }
 0x127   : > { %v814_v61 = vadd.f32 %v813_v29, %v2403_v38  ;;  %v1875_v32 = vpop.f32.mrb[26].mxu0  ;;  %1703 = vmatprep.subr.bf16.mxu0 %v918_v30  ;;  %1914 = vmatprep.subr.bf16.mxu1 %v918_v30 }
 0x128   : > { %v825_v31 = vadd.f32 %v1875_v32, %v2409_v43  ;;  %v816_v33 = vpop.f32.mrb[27].mxu0  ;;  %1704 = vmatpush3.bf16.msra.mxu0 %v2421_v13  ;;  %1922 = vmatpush3.bf16.msra.mxu1 %v2421_v13  ;;  %v870_v59 = vmax.f32 %v822_v28, 0.0  ;;  %v959_v34 = vpop.permute.xlu0 %958 }
 0x129   : > { %v817_v37 = vadd.f32 %v816_v33, %v2405_v39  ;;  %1705 = vmatprep.subr.bf16.mxu0 %v919_v25  ;;  %1915 = vmatprep.subr.bf16.mxu1 %v919_v25  ;;  %v868_v42 = vmax.f32 %v814_v61, 0.0  ;;  %v964_v23 = vpop.permute.xlu1 %963 }
 0x12a   : > { %v871_v44 = vmax.f32 %v825_v31, 0.0 }
 0x12b   : > { %v869_v46 = vmax.f32 %v817_v37, 0.0  ;;  %v1473_v37 = vlaneseq }
 0x12c   : > { %v921_v47 = vpack.c.bf16 %v871_v44, %v870_v59  ;;  %1706 = vmatpush3.bf16.msra.mxu0 %v2419_v12  ;;  %1923 = vmatpush3.bf16.msra.mxu1 %v2419_v12  ;;  %v2561_v25 = vpop.permute.xlu0 %1048 }
 0x12d   : > { %v920_v38 = vpack.c.bf16 %v869_v46, %v868_v42  ;;  %v1878_v43 = vpop.f32.mrb[28].mxu0  ;;  %v2563_v30 = vpop.permute.xlu1 %1053  ;;  %v1474_v59 = vshrl.u32 %v1473_v37, 7 }
 0x12e   : > { %v838_v49 = vadd.f32 %v1878_v43, %v2423_v17  ;;  %v829_v40 = vpop.f32.mrb[29].mxu0 }
 0x12f   : > { %v830_v13 = vadd.f32 %v829_v40, %v2411_v56  ;;  %v1879_v50 = vpop.f32.mrb[30].mxu0  ;;  %1707 = vmatprep.subr.bf16.mxu0 %v920_v38  ;;  %1916 = vmatprep.subr.bf16.mxu1 %v920_v38  ;;  %v1479_v46 = vsub.s32 1, %v1474_v59  ;;  %v1475_v38 = vsub.s32 0, %v1474_v59 }
 0x130   : > { %v841_v39 = vadd.f32 %v1879_v50, %v2425_v24  ;;  %v832_v48 = vpop.f32.mrb[31].mxu0  ;;  %1708 = vmatpush3.bf16.msra.mxu0 %v2429_v45  ;;  %1924 = vmatpush3.bf16.msra.mxu1 %v2429_v45  ;;  %v874_v12 = vmax.f32 %v838_v49, 0.0  ;;  %v1975_v24 = vld [vmem:[%s2673_s3 + $0x50] ss:$8 sps:$4 sm:$0xff]   ;;  %v1980_v45 = vld [vmem:[%s2673_s3 + $0x64] ss:$8 sps:$4 sm:$0xff]   ;;  %v2565_v35 = vpop.permute.xlu0 %968 }
 0x131   : > { %v833_v51 = vadd.f32 %v832_v48, %v2415_v60  ;;  %1709 = vmatprep.subr.bf16.mxu0 %v921_v47  ;;  %1917 = vmatprep.subr.bf16.mxu1 %v921_v47  ;;  %v872_v17 = vmax.f32 %v830_v13, 0.0  ;;  %v1972_v60 = vld [vmem:[%s2673_s3] ss:$8 sps:$4 sm:$0xff]   ;;  %v2567_v28 = vpop.permute.xlu1 %973 }
 0x132   : > { %v875_v52 = vmax.f32 %v841_v39, 0.0  ;;  %v1469_v47 = vld [vmem:[%s2675_s5] sm:$0x3] }
 0x133   : > { %v873_v53 = vmax.f32 %v833_v51, 0.0  ;;  %v1480_v43 = vrot.slane %v1469_v47, %v1479_v46  ;;  %v2586_v49 = vrot.slane %v1469_v47, %v1475_v38 }
 0x134   : > { %v923_v41 = vpack.c.bf16 %v875_v52, %v874_v12  ;;  %1710 = vmatpush3.bf16.msra.mxu0 %v2427_v36  ;;  %1925 = vmatpush3.bf16.msra.mxu1 %v2427_v36  ;;  %v1978_v36 = vld [vmem:[%s2673_s3 + $0x14] ss:$8 sps:$4 sm:$0xff]   ;;  %v2569_v29 = vpop.permute.xlu0 %1058 }
 0x135   : > { %v922_v56 = vpack.c.bf16 %v873_v53, %v872_v17  ;;  %v2571_v61 = vpop.permute.xlu1 %1063 }
 0x137   : > { %1711 = vmatprep.subr.bf16.mxu0 %v922_v56  ;;  %1918 = vmatprep.subr.bf16.mxu1 %v922_v56 }
 0x138   : > { %1712 = vmatpush3.bf16.msra.mxu0 %v2433_v58  ;;  %1926 = vmatpush3.bf16.msra.mxu1 %v2433_v58  ;;  %v1986_v58 = vld [vmem:[%s2673_s3 + $0x74] ss:$8 sps:$4 sm:$0xff]   ;;  %v2573_v32 = vpop.permute.xlu0 %978 }
 0x139   : > { %1713 = vmatprep.subr.bf16.mxu0 %v923_v41  ;;  %1919 = vmatprep.subr.bf16.mxu1 %v923_v41  ;;  %v2575_v31 = vpop.permute.xlu1 %983 }
 0x13c   : > { %1714 = vmatpush3.bf16.msra.mxu0 %v2431_v57  ;;  %1927 = vmatpush3.bf16.msra.mxu1 %v2431_v57  ;;  %v1984_v57 = vld [vmem:[%s2673_s3 + $0x24] ss:$8 sps:$4 sm:$0xff]   ;;  %v2577_v33 = vpop.permute.xlu0 %1068 }
 0x13d   : > { %v2579_v44 = vpop.permute.xlu1 %1073 }
 0x13f   : > { %1309 = vmatmul.mubr.bf16.vlgmr.msra.gmra.mrb[32].mxu0 %v1972_v60  ;;  %1349 = vmatmul.mubr.bf16.vlgmr.msra.gmra.mrb[0].mxu1 %v1975_v24 }
 0x140   : > { %1316 = vmatprep.mubr.bf16.mxu0 %v1978_v36  ;;  %1356 = vmatprep.mubr.bf16.mxu1 %v1980_v45  ;;  %v2581_v42 = vpop.permute.xlu0 %988 }
 0x141   : > { %v2588_v40 = vpop.permute.xlu1 %993 }
 0x144   : > { %v2590_v13 = vpop.permute.xlu0 %1078 }
 0x145   : > { %v2592_v50 = vpop.permute.xlu1 %1083 }
 0x147   : > { %1317 = vmatmul.mubr.bf16.gmra.mrb[36].mxu0 %v1982_v54  ;;  %1357 = vmatmul.mubr.bf16.gmra.mrb[4].mxu1 %v1983_v55 }
 0x148   : > { %1324 = vmatprep.mubr.bf16.mxu0 %v1984_v57  ;;  %1364 = vmatprep.mubr.bf16.mxu1 %v1986_v58  ;;  %v2594_v39 = vpop.permute.xlu0 %998 }
 0x149   : > { %v2596_v48 = vpop.permute.xlu1 %1003 }
 0x14c   : > { %v2598_v51 = vpop.permute.xlu0 %1088 }
 0x14d   : > { %v2600_v12 = vpop.permute.xlu1 %1093 }
 0x14f   : > { %1325 = vmatmul.mubr.bf16.gmra.mrb[40].mxu0 %v1988_v62  ;;  %1365 = vmatmul.mubr.bf16.gmra.mrb[8].mxu1 %v1989_v63 }
 0x150   : > { %1332 = vmatprep.mubr.bf16.mxu0 %v1990_v0  ;;  %1372 = vmatprep.mubr.bf16.mxu1 %v1992_v1  ;;  %v1009_v52 = vpop.permute.xlu0 %1008 }
 0x151   : > { %v1014_v17 = vpop.permute.xlu1 %1013 }
 0x154   : > { %v2602_v53 = vpop.permute.xlu0 %1098 }
 0x155   : > { %v2604_v41 = vpop.permute.xlu1 %1103 }
 0x157   : > { %1333 = vmatmul.mubr.bf16.gmra.mrb[44].mxu0 %v1994_v2  ;;  %1373 = vmatmul.mubr.bf16.gmra.mrb[12].mxu1 %v1995_v3 }
 0x158   : > { %1340 = vmatprep.mubr.bf16.mxu0 %v1996_v4  ;;  %1380 = vmatprep.mubr.bf16.mxu1 %v1998_v5  ;;  %v1019_v56 = vpop.permute.xlu0 %1018 }
 0x15f   : > { %1341 = vmatmul.mubr.bf16.gmra.mrb[48].mxu0 %v2000_v6  ;;  %1381 = vmatmul.mubr.bf16.gmra.mrb[16].mxu1 %v2001_v7  ;;  %v1024_v6 = vpop.permute.xlu1 %1023  ;;  %v2606_v7 = vpop.permute.xlu0 %1108 }
 0x160   : > { %1388 = vmatprep.mubr.bf16.mxu1 %v2002_v8  ;;  %1547 = vmatprep.mubr.f32.mxu0 %v1480_v43 }
 0x167   : > { %1389 = vmatmul.mubr.bf16.gmra.mrb[20].mxu1 %v2004_v9 }
 0x168   : > { %1396 = vmatprep.mubr.bf16.mxu1 %v2005_v10 }
 0x16f   : > { %1397 = vmatmul.mubr.bf16.gmra.mrb[24].mxu1 %v2007_v11 }
 0x170   : > { %1404 = vmatprep.mubr.bf16.mxu1 %v2008_v14 }
 0x177   : > { %1405 = vmatmul.mubr.bf16.gmra.mrb[28].mxu1 %v2010_v15 }
 0x178   : > { %1412 = vmatprep.mubr.bf16.mxu1 %v2011_v16 }
 0x17f   : > { %1413 = vmatmul.mubr.bf16.gmra.mrb[32].mxu1 %v2013_v26 }
 0x180   : > { %1420 = vmatprep.mubr.bf16.mxu1 %v2014_v18 }
 0x187   : > { %1421 = vmatmul.mubr.bf16.gmra.mrb[36].mxu1 %v2016_v20 }
 0x188   : > { %1428 = vmatprep.mubr.bf16.mxu1 %v2017_v27 }
 0x18f   : > { %1429 = vmatmul.mubr.bf16.gmra.mrb[40].mxu1 %v2019_v22 }
 0x212   : > { %v1715_v60 = vpop.f32.mrb[32].mxu0  ;;  %v1745_v24 = vpop.f32.mrb[0].mxu1 }
 0x213   : > { %v1716_v36 = vpop.f32.mrb[33].mxu0  ;;  %v1746_v45 = vpop.f32.mrb[1].mxu1 }
 0x214   : > { %v1717_v54 = vadd.f32 %v1716_v36, %v1715_v60  ;;  %v1747_v55 = vadd.f32 %v1746_v45, %v1745_v24  ;;  %v1718_v57 = vpop.f32.mrb[34].mxu0  ;;  %v1748_v58 = vpop.f32.mrb[2].mxu1 }
 0x215   : > { %v1719_v62 = vpop.f32.mrb[35].mxu0  ;;  %v1749_v63 = vpop.f32.mrb[3].mxu1 }
 0x216   : > { %v1311_v0 = vadd.f32 %v1717_v54, %v959_v34  ;;  %v1351_v1 = vadd.f32 %v1747_v55, %v1009_v52  ;;  %v1720_v2 = vadd.f32 %v1719_v62, %v1718_v57  ;;  %v1750_v3 = vadd.f32 %v1749_v63, %v1748_v58  ;;  %v2614_v60 = vpop.permute.xlu1 %1113  ;;  %v1029_v24 = vpop.permute.xlu0 %1028 }
 0x218   : > { %v1314_v4 = vadd.f32 %v1720_v2, %v964_v23  ;;  %v1354_v5 = vadd.f32 %v1750_v3, %v1014_v17  ;;  %v1437_v8 = vmax.f32 %v1311_v0, 0.0  ;;  %v1447_v9 = vmax.f32 %v1351_v1, 0.0 }
 0x21a   : > { %v1438_v10 = vmax.f32 %v1314_v4, 0.0  ;;  %v1448_v11 = vmax.f32 %v1354_v5, 0.0  ;;  %v1721_v14 = vpop.f32.mrb[36].mxu0  ;;  %v1751_v15 = vpop.f32.mrb[4].mxu1 }
 0x21b   : > { %v1722_v16 = vpop.f32.mrb[37].mxu0  ;;  %v1752_v26 = vpop.f32.mrb[5].mxu1 }
 0x21c   : > { %v2608_v18 = vpack.c.bf16 %v1438_v10, %v1437_v8  ;;  %v2610_v20 = vpack.c.bf16 %v1448_v11, %v1447_v9  ;;  %v1723_v27 = vadd.f32 %v1722_v16, %v1721_v14  ;;  %v1753_v22 = vadd.f32 %v1752_v26, %v1751_v15  ;;  %v1724_v34 = vpop.f32.mrb[38].mxu0  ;;  %v1754_v23 = vpop.f32.mrb[6].mxu1 }
 0x21d   : > { %v1725_v37 = vpop.f32.mrb[39].mxu0  ;;  %v1755_v59 = vpop.f32.mrb[7].mxu1 }
 0x21e   : > { %v1319_v46 = vadd.f32 %v1723_v27, %v2565_v35  ;;  %v1359_v47 = vadd.f32 %v1753_v22, %v1019_v56  ;;  %v1726_v38 = vadd.f32 %v1725_v37, %v1724_v34  ;;  %v1756_v43 = vadd.f32 %v1755_v59, %v1754_v23  ;;  %v1034_v10 = vpop.permute.xlu1 %1033 }
 0x220   : > { %v1322_v52 = vadd.f32 %v1726_v38, %v2567_v28  ;;  %v1362_v17 = vadd.f32 %v1756_v43, %v1024_v6  ;;  %v1439_v36 = vmax.f32 %v1319_v46, 0.0  ;;  %v1449_v45 = vmax.f32 %v1359_v47, 0.0 }
 0x222   : > { %v1440_v54 = vmax.f32 %v1322_v52, 0.0  ;;  %v1450_v55 = vmax.f32 %v1362_v17, 0.0  ;;  %v1727_v57 = vpop.f32.mrb[40].mxu0  ;;  %v1757_v58 = vpop.f32.mrb[8].mxu1 }
 0x223   : > { %v1728_v62 = vpop.f32.mrb[41].mxu0  ;;  %v1758_v63 = vpop.f32.mrb[9].mxu1 }
 0x224   : > { %v2616_v0 = vpack.c.bf16 %v1440_v54, %v1439_v36  ;;  %v2618_v35 = vpack.c.bf16 %v1450_v55, %v1449_v45  ;;  %v1729_v56 = vadd.f32 %v1728_v62, %v1727_v57  ;;  %v1759_v1 = vadd.f32 %v1758_v63, %v1757_v58  ;;  %v1730_v2 = vpop.f32.mrb[42].mxu0  ;;  %v1760_v28 = vpop.f32.mrb[10].mxu1 }
 0x225   : > { %v1731_v3 = vpop.f32.mrb[43].mxu0  ;;  %v1761_v4 = vpop.f32.mrb[11].mxu1 }
 0x226   : > { %v1327_v5 = vadd.f32 %v1729_v56, %v2573_v32  ;;  %v1367_v6 = vadd.f32 %v1759_v1, %v1029_v24  ;;  %v1732_v8 = vadd.f32 %v1731_v3, %v1730_v2  ;;  %v1762_v9 = vadd.f32 %v1761_v4, %v1760_v28 }
 0x228   : > { %v1330_v11 = vadd.f32 %v1732_v8, %v2575_v31  ;;  %v1370_v14 = vadd.f32 %v1762_v9, %v1034_v10  ;;  %v1441_v15 = vmax.f32 %v1327_v5, 0.0  ;;  %v1451_v16 = vmax.f32 %v1367_v6, 0.0 }
 0x22a   : > { %v1442_v26 = vmax.f32 %v1330_v11, 0.0  ;;  %v1452_v27 = vmax.f32 %v1370_v14, 0.0  ;;  %v1733_v22 = vpop.f32.mrb[44].mxu0  ;;  %v1763_v34 = vpop.f32.mrb[12].mxu1 }
 0x22b   : > { %v1734_v23 = vpop.f32.mrb[45].mxu0  ;;  %v1764_v37 = vpop.f32.mrb[13].mxu1 }
 0x22c   : > { %v2622_v59 = vpack.c.bf16 %v1442_v26, %v1441_v15  ;;  %v2624_v46 = vpack.c.bf16 %v1452_v27, %v1451_v16  ;;  %v1735_v32 = vadd.f32 %v1734_v23, %v1733_v22  ;;  %v1765_v47 = vadd.f32 %v1764_v37, %v1763_v34  ;;  %v1736_v38 = vpop.f32.mrb[46].mxu0  ;;  %v1766_v43 = vpop.f32.mrb[14].mxu1 }
 0x22d   : > { %v1737_v52 = vpop.f32.mrb[47].mxu0  ;;  %v1767_v17 = vpop.f32.mrb[15].mxu1 }
 0x22e   : > { %v1335_v31 = vadd.f32 %v1735_v32, %v2581_v42  ;;  %v1375_v24 = vadd.f32 %v1765_v47, %v2557_v19  ;;  %v1738_v36 = vadd.f32 %v1737_v52, %v1736_v38  ;;  %v1768_v45 = vadd.f32 %v1767_v17, %v1766_v43 }
 0x230   : > { %v1338_v54 = vadd.f32 %v1738_v36, %v2588_v40  ;;  %v1378_v55 = vadd.f32 %v1768_v45, %v2559_v21  ;;  %v1443_v57 = vmax.f32 %v1335_v31, 0.0  ;;  %v1453_v58 = vmax.f32 %v1375_v24, 0.0 }
 0x232   : > { %v1444_v62 = vmax.f32 %v1338_v54, 0.0  ;;  %v1454_v63 = vmax.f32 %v1378_v55, 0.0  ;;  %v1739_v56 = vpop.f32.mrb[48].mxu0  ;;  %v1769_v1 = vpop.f32.mrb[16].mxu1 }
 0x233   : > { %v1740_v2 = vpop.f32.mrb[49].mxu0  ;;  %v1770_v28 = vpop.f32.mrb[17].mxu1 }
 0x234   : > { %v1894_v3 = vpack.c.bf16 %v1444_v62, %v1443_v57  ;;  %v1741_v4 = vadd.f32 %v1740_v2, %v1739_v56  ;;  %v1771_v5 = vadd.f32 %v1770_v28, %v1769_v1  ;;  %v1742_v42 = vpop.f32.mrb[50].mxu0  ;;  %v1772_v6 = vpop.f32.mrb[18].mxu1  ;;  %v1880_v19 = vpack.c.bf16 %v1454_v63, %v1453_v58 }
 0x235   : > { %v1743_v8 = vpop.f32.mrb[51].mxu0  ;;  %v1773_v9 = vpop.f32.mrb[19].mxu1 }
 0x236   : > { %v1343_v40 = vadd.f32 %v1741_v4, %v2594_v39  ;;  %v1383_v21 = vadd.f32 %v1771_v5, %v2561_v25  ;;  %v1744_v10 = vadd.f32 %v1743_v8, %v1742_v42  ;;  %v1774_v11 = vadd.f32 %v1773_v9, %v1772_v6  ;;  %1881 = vmatprep.subr.bf16.mxu0 %v1880_v19 }
 0x237   : > { %1883 = vmatpush3.bf16.msra.mxu0 %v2608_v18 }
 0x238   : > { %v1346_v14 = vadd.f32 %v1744_v10, %v2596_v48  ;;  %v1386_v15 = vadd.f32 %v1774_v11, %v2563_v30  ;;  %v1445_v16 = vmax.f32 %v1343_v40, 0.0  ;;  %v1455_v26 = vmax.f32 %v1383_v21, 0.0 }
 0x23a   : > { %v1446_v27 = vmax.f32 %v1346_v14, 0.0  ;;  %v1456_v22 = vmax.f32 %v1386_v15, 0.0  ;;  %v1775_v34 = vpop.f32.mrb[20].mxu1 }
 0x23b   : > { %v1776_v23 = vpop.f32.mrb[21].mxu1 }
 0x23c   : > { %v1898_v37 = vpack.c.bf16 %v1446_v27, %v1445_v16  ;;  %v1777_v32 = vadd.f32 %v1776_v23, %v1775_v34  ;;  %v1778_v39 = vpop.f32.mrb[22].mxu1  ;;  %v1884_v47 = vpack.c.bf16 %v1456_v22, %v1455_v26 }
 0x23d   : > { %v1779_v25 = vpop.f32.mrb[23].mxu1 }
 0x23e   : > { %v1391_v38 = vadd.f32 %v1777_v32, %v2569_v29  ;;  %v1780_v43 = vadd.f32 %v1779_v25, %v1778_v39  ;;  %1885 = vmatprep.subr.bf16.mxu0 %v1884_v47 }
 0x23f   : > { %1887 = vmatpush3.bf16.msra.mxu0 %v2616_v0 }
 0x240   : > { %v1394_v48 = vadd.f32 %v1780_v43, %v2571_v61  ;;  %v1457_v30 = vmax.f32 %v1391_v38, 0.0 }
 0x242   : > { %v1458_v18 = vmax.f32 %v1394_v48, 0.0  ;;  %v1781_v52 = vpop.f32.mrb[24].mxu1  ;;  %v1471_v48 = vstv %s1470_s18 }
 0x243   : > { %v1782_v17 = vpop.f32.mrb[25].mxu1 }
 0x244   : > { %v1783_v31 = vadd.f32 %v1782_v17, %v1781_v52  ;;  %v1784_v24 = vpop.f32.mrb[26].mxu1  ;;  %v1888_v36 = vpack.c.bf16 %v1458_v18, %v1457_v30 }
 0x245   : > { %v1785_v45 = vpop.f32.mrb[27].mxu1 }
 0x246   : > { %v1399_v54 = vadd.f32 %v1783_v31, %v2577_v33  ;;  %v1786_v55 = vadd.f32 %v1785_v45, %v1784_v24  ;;  %1889 = vmatprep.subr.bf16.mxu0 %v1888_v36 }
 0x247   : > { %1891 = vmatpush3.bf16.msra.mxu0 %v2622_v59 }
 0x248   : > { %v1402_v29 = vadd.f32 %v1786_v55, %v2579_v44  ;;  %v1459_v57 = vmax.f32 %v1399_v54, 0.0 }
 0x24a   : > { %v1460_v0 = vmax.f32 %v1402_v29, 0.0  ;;  %v1787_v58 = vpop.f32.mrb[28].mxu1 }
 0x24b   : > { %v1788_v61 = vpop.f32.mrb[29].mxu1 }
 0x24c   : > { %v1789_v62 = vadd.f32 %v1788_v61, %v1787_v58  ;;  %v1790_v63 = vpop.f32.mrb[30].mxu1  ;;  %v1892_v56 = vpack.c.bf16 %v1460_v0, %v1459_v57 }
 0x24d   : > { %v1791_v1 = vpop.f32.mrb[31].mxu1 }
 0x24e   : > { %v1407_v2 = vadd.f32 %v1789_v62, %v2590_v13  ;;  %v1792_v28 = vadd.f32 %v1791_v1, %v1790_v63  ;;  %1893 = vmatprep.subr.bf16.mxu0 %v1892_v56 }
 0x24f   : > { %1895 = vmatpush3.bf16.msra.mxu0 %v1894_v3 }
 0x250   : > { %v1410_v33 = vadd.f32 %v1792_v28, %v2592_v50  ;;  %v1461_v4 = vmax.f32 %v1407_v2, 0.0 }
 0x252   : > { %v1462_v5 = vmax.f32 %v1410_v33, 0.0  ;;  %v1793_v59 = vpop.f32.mrb[32].mxu1 }
 0x253   : > { %v1794_v42 = vpop.f32.mrb[33].mxu1 }
 0x254   : > { %v1795_v44 = vadd.f32 %v1794_v42, %v1793_v59  ;;  %v1796_v6 = vpop.f32.mrb[34].mxu1  ;;  %v1896_v19 = vpack.c.bf16 %v1462_v5, %v1461_v4 }
 0x255   : > { %v1797_v8 = vpop.f32.mrb[35].mxu1 }
 0x256   : > { %v1415_v9 = vadd.f32 %v1795_v44, %v2598_v51  ;;  %v1798_v40 = vadd.f32 %v1797_v8, %v1796_v6  ;;  %1897 = vmatprep.subr.bf16.mxu0 %v1896_v19 }
 0x257   : > { %1899 = vmatpush3.bf16.msra.mxu0 %v1898_v37 }
 0x258   : > { %v1418_v13 = vadd.f32 %v1798_v40, %v2600_v12  ;;  %v1463_v21 = vmax.f32 %v1415_v9, 0.0 }
 0x25a   : > { %v1464_v10 = vmax.f32 %v1418_v13, 0.0  ;;  %v1799_v3 = vpop.f32.mrb[36].mxu1 }
 0x25b   : > { %v1800_v11 = vpop.f32.mrb[37].mxu1 }
 0x25c   : > { %v1801_v50 = vadd.f32 %v1800_v11, %v1799_v3  ;;  %v1802_v14 = vpop.f32.mrb[38].mxu1  ;;  %v1900_v15 = vpack.c.bf16 %v1464_v10, %v1463_v21 }
 0x25d   : > { %v1803_v16 = vpop.f32.mrb[39].mxu1 }
 0x25e   : > { %v1423_v26 = vadd.f32 %v1801_v50, %v2602_v53  ;;  %v1804_v27 = vadd.f32 %v1803_v16, %v1802_v14  ;;  %1901 = vmatprep.subr.bf16.mxu0 %v1900_v15 }
 0x25f   : > { %1903 = vmatpush3.bf16.msra.mxu0 %v2610_v20 }
 0x260   : > { %v1426_v51 = vadd.f32 %v1804_v27, %v2604_v41  ;;  %v1465_v22 = vmax.f32 %v1423_v26, 0.0 }
 0x262   : > { %v1466_v34 = vmax.f32 %v1426_v51, 0.0  ;;  %v1805_v23 = vpop.f32.mrb[40].mxu1 }
 0x263   : > { %v1806_v12 = vpop.f32.mrb[41].mxu1 }
 0x264   : > { %v1807_v37 = vadd.f32 %v1806_v12, %v1805_v23  ;;  %v1808_v32 = vpop.f32.mrb[42].mxu1  ;;  %v1904_v39 = vpack.c.bf16 %v1466_v34, %v1465_v22 }
 0x265   : > { %v1809_v47 = vpop.f32.mrb[43].mxu1 }
 0x266   : > { %v1431_v25 = vadd.f32 %v1807_v37, %v2606_v7  ;;  %v1810_v38 = vadd.f32 %v1809_v47, %v1808_v32  ;;  %1905 = vmatprep.subr.bf16.mxu0 %v1904_v39 }
 0x267   : > { %1907 = vmatpush3.bf16.msra.mxu0 %v2618_v35 }
 0x268   : > { %v1434_v53 = vadd.f32 %v1810_v38, %v2614_v60  ;;  %v1467_v20 = vmax.f32 %v1431_v25, 0.0 }
 0x26a   : > { %v1468_v41 = vmax.f32 %v1434_v53, 0.0 }
 0x26c   : > { %v1908_v43 = vpack.c.bf16 %v1468_v41, %v1467_v20 }
 0x26e   : > { %1909 = vmatprep.subr.bf16.mxu0 %v1908_v43 }
 0x26f   : > { %1911 = vmatpush3.bf16.msra.mxu0 %v2624_v46 }
 0x272   : > { %1548 = vmatmul.mubr.f32.vlgmr.msra.gmra.mrb[52].mxu0 %v2586_v49 }
 0x345   : > { %v1843_v7 = vpop.f32.mrb[52].mxu0 }
 0x346   : > { %v1844_v30 = vpop.f32.mrb[53].mxu0 }
 0x347   : > { %v1845_v18 = vadd.f32 %v1844_v30, %v1843_v7 }
 0x349   : > { %v1550_v60 = vadd.f32 %v1845_v18, %v1471_v48 }
 0x34b   : > { %1553 = vst [vmem:[%s320_s21] sm:$0x1] %v1550_v60 }
 0x34c PF: > { %p15_p9 = scmp.ge.s32.totalorder %s2105_s29, 5   ;;  %s2678_s26 = smov %s2038_s27 }
 0x34d   : > { %s2679_s27 = smov %s2114_s9  ;;  %s2680_s28 = smov %s2105_s29 }
 0x34e   :  { %17 = sbr.rel (!%p15_p9) target bundleno = 4 (0x4), region = 124 }

</bundles_post_ra>
